<compile_context>
chip_gen: v7x
topology: tpu7x:2x2x1
jax: 0.10.0
libtpu: 0.0.40
codegen_flags: <defaults>
</compile_context>

<pallas_src>
import jax
import jax.numpy as jnp
from jax.experimental import pallas as pl
from jax.experimental.pallas import tpu as pltpu


def _hbm_copy_kernel(x_hbm_ref, o_hbm_ref, sem):
    # Single whole-array HBM -> HBM DMA. No VMEM staging, no vld/vst traffic.
    cp = pltpu.make_async_copy(x_hbm_ref, o_hbm_ref, sem)
    cp.start()
    cp.wait()


def identity_materialize(x: jax.Array) -> jax.Array:
    """Identity that produces a *distinct* output buffer via one HBM->HBM DMA.

    Only use this if a fresh buffer is contractually required; the plain
    identity (`identity_forward`) never copies.
    """
    x = jnp.asarray(x)
    return pl.pallas_call(
        _hbm_copy_kernel,
        out_shape=jax.ShapeDtypeStruct(x.shape, x.dtype),
        in_specs=[pl.BlockSpec(memory_space=pl.ANY)],
        out_specs=pl.BlockSpec(memory_space=pl.ANY),
        scratch_shapes=[pltpu.SemaphoreType.DMA],
    )(x)


def identity_forward(*inputs):
    """Reproduces Identity.forward(*input) -> input.

    Exactly like the PyTorch module: the same arrays are returned, as a tuple,
    with no copy and no kernel launch (the optimal TPU identity).
    """
    return tuple(inputs)


if __name__ == "__main__":
    key = jax.random.PRNGKey(0)
    k1, k2 = jax.random.split(key)

    # Example inputs consistent with a generic forward: an NCHW tensor and a
    # (batch, seq, hidden) tensor (Identity accepts arbitrary *args).
    x = jax.random.normal(k1, (2, 4, 16, 16), dtype=jnp.float32)
    y = jax.random.normal(k2, (2, 8, 32), dtype=jnp.float32)

    # Default zero-copy identity (matches the PyTorch module's semantics).
    out = identity_forward(x, y)
    out = jax.block_until_ready(out)
    assert isinstance(out, tuple) and len(out) == 2
    assert out[0].shape == x.shape and out[0].dtype == x.dtype
    assert out[1].shape == y.shape and out[1].dtype == y.dtype
    assert bool(jnp.all(out[0] == x)) and bool(jnp.all(out[1] == y))

    # Kernel path (distinct output buffer via direct HBM->HBM DMA), run once.
    xc = identity_materialize(x)
    yc = identity_materialize(y)
    xc, yc = jax.block_until_ready((xc, yc))
    assert xc.shape == x.shape and xc.dtype == x.dtype
    assert yc.shape == y.shape and yc.dtype == y.dtype
    assert bool(jnp.all(xc == x)) and bool(jnp.all(yc == y))

    print("KERNEL_OK")
</pallas_src>

<mosaic_0001>
module attributes {stable_mosaic.version = 11 : i64} {
  func.func @_hbm_copy_kernel(%arg0: memref<2x4x16x16xf32, #tpu.memory_space<any>>, %arg1: memref<2x4x16x16xf32, #tpu.memory_space<any>>, %arg2: memref<!tpu.dma_semaphore, #tpu.memory_space<semaphore_mem>>) attributes {dimension_semantics = [], scalar_prefetch = 0 : i64, scratch_operands = 1 : i64, tpu.core_type = #tpu.core_type<tc>} {
    tpu.enqueue_dma source(%arg0 : memref<2x4x16x16xf32, #tpu.memory_space<any>>) target(%arg1 : memref<2x4x16x16xf32, #tpu.memory_space<any>>) target_semaphore(%arg2 : memref<!tpu.dma_semaphore, #tpu.memory_space<semaphore_mem>>)
    tpu.wait_dma2 semaphore(%arg2 : memref<!tpu.dma_semaphore, #tpu.memory_space<semaphore_mem>>) src(%arg0 : memref<2x4x16x16xf32, #tpu.memory_space<any>>) dst(%arg1 : memref<2x4x16x16xf32, #tpu.memory_space<any>>)
    return
  }
}

</mosaic_0001>

<bundles_post_ra>
// kernel: tpu_custom_call.1
= control target key start
LH: loop header
LB: loop body
LE: loop exit
PB: predicated region body
PF: predicated region fallthrough
CT: control target
= control target key end

     0   :  { %s36_s6 = smov [#allocation2]   ;;  %s37_s7 = smov [#allocation3]   ;;  %s55_s0 = inlined_call_operand.hbm [shape: f32[2,4,16,16], index: 0, kind: input, shape index: {}]   ;;  %s56_s1 = inlined_call_operand.hbm [shape: f32[2,4,16,16], index: 1, kind: output, shape index: {}]  }
   0x1   :  { %s38_s8 = smov 0  }
   0x2   :  { %18 = dma.general %s55_s0, 2048, %s56_s1, %s36_s6, %s37_s7, [#allocation4], %s38_s8, 0  }
   0x3   :  { %34 = dma.done.wait [#allocation2], 2048 }
   0x4   :  { %35 = vsyncadd [#allocation2], 4294965248 }
   0x5   :  { %24 = vsyncmov [#allocation2] }
   0x8   :  { %s25_s13 = vpop.sfrf %24 }
   0x9   :  { %p30_p0 = scmp.ne.s32.totalorder %s25_s13, 0 }
   0xb   :  { %29 = shalt.err (%p30_p0)  }

</bundles_post_ra>
